<compile_context>
chip_gen: v7x
topology: tpu7x:2x2x1
jax: 0.10.0
libtpu: 0.0.40
codegen_flags: <defaults>
</compile_context>

<pallas_src>
import functools

import jax
import jax.numpy as jnp
from jax.experimental import pallas as pl
from jax.experimental.pallas import tpu as pltpu


def _inorm_kernel(x_ref, scale_ref, offset_ref, y_ref, mean_ref, *,
                  eps, inv_count, true_hw, padded_hw):
    # x_ref: (block_rows, hw_pad) block of instances; scale/offset: (block_rows, 1).
    x = x_ref[...].astype(jnp.float32)

    # Per-instance mean. Zero-padded lanes (if any) contribute 0 to the sum and
    # inv_count = 1/true_hw, so the mean stays exact.
    mean = jnp.sum(x, axis=-1, keepdims=True) * inv_count          # (BR, 1)

    xc = x - mean                                                  # hoisted once
    if padded_hw != true_hw:
        # Mask padded lanes so they don't pollute the variance.
        col = jax.lax.broadcasted_iota(jnp.int32, x.shape, 1)
        xc = jnp.where(col < true_hw, xc, 0.0)

    var = jnp.sum(xc * xc, axis=-1, keepdims=True) * inv_count     # biased var
    inv_std = jax.lax.rsqrt(var + eps)                             # EUP rsqrt

    # Fold affine: one fused mul-add per element instead of sub+mul+mul+add.
    a = inv_std * scale_ref[...]                                   # (BR, 1)
    y = xc * a + offset_ref[...]

    y_ref[...] = y.astype(y_ref.dtype)
    mean_ref[...] = mean.astype(mean_ref.dtype)


def _pick_block_rows(nc, hw_pad, itemsize, sublane, target_tile_bytes):
    """Largest row-block (multiple of the native sublane tile) whose x tile is
    ~target_tile_bytes, capped by N*C and kept to >=2 grid steps when possible."""
    rows = target_tile_bytes // max(1, hw_pad * itemsize)
    rows = max(sublane, (rows // sublane) * sublane)
    nc_ceil = ((nc + sublane - 1) // sublane) * sublane
    rows = min(rows, nc_ceil)
    # Keep at least 2 grid steps when N*C allows (lets v7x's 2 TCs split the grid).
    if nc_ceil >= 2 * sublane:
        rows = min(rows, max(sublane, ((nc_ceil // 2) // sublane) * sublane))
    return rows


def instance_norm_with_stats(x, scale, offset, eps=1e-5, block_rows=None,
                             target_tile_bytes=4 << 20):
    """x: (N, C, H, W); scale, offset: (C,). Returns (x_norm (N,C,H,W), mean (N,C))."""
    N, C, H, W = x.shape
    NC, HW = N * C, H * W
    x_itemsize = jnp.dtype(x.dtype).itemsize

    # Native sublane multiple for the input dtype (f32:8, bf16:16, int8/fp8:32).
    if x_itemsize >= 4:
        sub = 8
    elif x_itemsize == 2:
        sub = 16
    else:
        sub = 32

    # Pad H*W up to a multiple of 128 so y stores are lane-dense (unmasked vst).
    hw_pad = ((HW + 127) // 128) * 128

    if block_rows is None:
        block_rows = _pick_block_rows(NC, hw_pad, x_itemsize, sub, target_tile_bytes)
    else:
        block_rows = max(sub, (int(block_rows) // sub) * sub)

    # Pad N*C up to a multiple of block_rows (no divisibility requirement).
    nc_pad = ((NC + block_rows - 1) // block_rows) * block_rows

    x2 = x.reshape(NC, HW)
    if nc_pad != NC or hw_pad != HW:
        x2 = jnp.pad(x2, ((0, nc_pad - NC), (0, hw_pad - HW)))

    # row index = n*C + c  ->  per-row params repeat the C-vector N times.
    scale_rows = jnp.tile(scale.astype(jnp.float32), N).reshape(NC, 1)
    offset_rows = jnp.tile(offset.astype(jnp.float32), N).reshape(NC, 1)
    if nc_pad != NC:
        scale_rows = jnp.pad(scale_rows, ((0, nc_pad - NC), (0, 0)))
        offset_rows = jnp.pad(offset_rows, ((0, nc_pad - NC), (0, 0)))

    grid = (nc_pad // block_rows,)

    # Size the scoped-VMEM limit to the chosen tiles (double-buffered in+out,
    # plus headroom for f32 in-kernel temporaries and the tiny per-row tiles).
    tile_io_bytes = block_rows * hw_pad * x_itemsize
    tile_f32_bytes = block_rows * hw_pad * 4
    small_bytes = 8 * block_rows * 128 * 4
    vmem_needed = 4 * tile_io_bytes + 3 * tile_f32_bytes + small_bytes + (2 << 20)
    vmem_limit = int(min(64 << 20, max(vmem_needed, 16 << 20)))  # v7x-safe cap

    kernel = functools.partial(
        _inorm_kernel,
        eps=float(eps),
        inv_count=1.0 / float(HW),
        true_hw=HW,
        padded_hw=hw_pad,
    )

    y2, mean2 = pl.pallas_call(
        kernel,
        out_shape=(
            jax.ShapeDtypeStruct((nc_pad, hw_pad), x.dtype),
            jax.ShapeDtypeStruct((nc_pad, 1), jnp.float32),
        ),
        grid_spec=pltpu.PrefetchScalarGridSpec(
            num_scalar_prefetch=0,
            grid=grid,
            in_specs=[
                pl.BlockSpec((block_rows, hw_pad), lambda i: (i, 0)),
                pl.BlockSpec((block_rows, 1), lambda i: (i, 0)),
                pl.BlockSpec((block_rows, 1), lambda i: (i, 0)),
            ],
            out_specs=[
                pl.BlockSpec((block_rows, hw_pad), lambda i: (i, 0)),
                pl.BlockSpec((block_rows, 1), lambda i: (i, 0)),
            ],
        ),
        compiler_params=pltpu.CompilerParams(
            dimension_semantics=("parallel",),
            vmem_limit_bytes=vmem_limit,
        ),
    )(x2, scale_rows, offset_rows)

    x_norm = y2[:NC, :HW].reshape(N, C, H, W)
    input_mean = mean2[:NC, 0].reshape(N, C)
    return x_norm, input_mean


if __name__ == "__main__":
    key = jax.random.PRNGKey(0)
    kx, ks = jax.random.split(key)

    N, C, H, W = 2, 4, 16, 16
    x = jax.random.normal(kx, (N, C, H, W), dtype=jnp.float32)
    # Deterministic parameter init matching module __init__ shapes:
    # scale ~ randn(num_features), offset = zeros(num_features)
    scale = jax.random.normal(ks, (C,), dtype=jnp.float32)
    offset = jnp.zeros((C,), dtype=jnp.float32)

    x_norm, input_mean = instance_norm_with_stats(x, scale, offset, eps=1e-5)
    jax.block_until_ready((x_norm, input_mean))

    # Reference check in plain JAX
    mean_ref = x.mean(axis=(2, 3), keepdims=True)
    var_ref = ((x - mean_ref) ** 2).mean(axis=(2, 3), keepdims=True)
    xn_ref = (x - mean_ref) / jnp.sqrt(var_ref + 1e-5)
    xn_ref = xn_ref * scale.reshape(1, -1, 1, 1) + offset.reshape(1, -1, 1, 1)
    mean_flat_ref = x.mean(axis=(2, 3))

    assert jnp.allclose(x_norm, xn_ref, atol=1e-5, rtol=1e-5)
    assert jnp.allclose(input_mean, mean_flat_ref, atol=1e-6, rtol=1e-6)

    print("KERNEL_OK")
</pallas_src>

<mosaic_0001>
module attributes {stable_mosaic.version = 11 : i64} {
  func.func @_inorm_kernel(%arg0: i32, %arg1: memref<8x256xf32, #tpu.memory_space<vmem>>, %arg2: memref<8x1xf32, #tpu.memory_space<vmem>>, %arg3: memref<8x1xf32, #tpu.memory_space<vmem>>, %arg4: memref<8x256xf32, #tpu.memory_space<vmem>>, %arg5: memref<8x1xf32, #tpu.memory_space<vmem>>) attributes {dimension_semantics = [#tpu.dimension_semantics<parallel>], iteration_bounds = array<i64: 1>, scalar_prefetch = 0 : i64, scratch_operands = 0 : i64, tpu.core_type = #tpu.core_type<tc>, window_params = [{transform_indices = @transform_0, window_bounds = array<i64: 8, 256>}, {transform_indices = @transform_1, window_bounds = array<i64: 8, 1>}, {transform_indices = @transform_2, window_bounds = array<i64: 8, 1>}, {transform_indices = @transform_3, window_bounds = array<i64: 8, 256>}, {transform_indices = @transform_4, window_bounds = array<i64: 8, 1>}]} {
    %c0 = arith.constant 0 : index
    %c0_0 = arith.constant 0 : index
    %0 = vector.load %arg1[%c0, %c0_0] : memref<8x256xf32, #tpu.memory_space<vmem>>, vector<8x256xf32>
    %cst = arith.constant dense<0.000000e+00> : vector<8xf32>
    %1 = vector.multi_reduction <add>, %0, %cst [1] : vector<8x256xf32> to vector<8xf32>
    %2 = vector.shape_cast %1 : vector<8xf32> to vector<8x1xf32>
    %cst_1 = arith.constant 3.906250e-03 : f32
    %3 = vector.broadcast %cst_1 : f32 to vector<8x1xf32>
    %4 = arith.mulf %2, %3 : vector<8x1xf32>
    %5 = vector.broadcast %4 : vector<8x1xf32> to vector<8x256xf32>
    %6 = arith.subf %0, %5 : vector<8x256xf32>
    %7 = arith.mulf %6, %6 : vector<8x256xf32>
    %cst_2 = arith.constant dense<0.000000e+00> : vector<8xf32>
    %8 = vector.multi_reduction <add>, %7, %cst_2 [1] : vector<8x256xf32> to vector<8xf32>
    %9 = vector.shape_cast %8 : vector<8xf32> to vector<8x1xf32>
    %cst_3 = arith.constant 3.906250e-03 : f32
    %10 = vector.broadcast %cst_3 : f32 to vector<8x1xf32>
    %11 = arith.mulf %9, %10 : vector<8x1xf32>
    %cst_4 = arith.constant 9.99999974E-6 : f32
    %12 = vector.broadcast %cst_4 : f32 to vector<8x1xf32>
    %13 = arith.addf %11, %12 : vector<8x1xf32>
    %14 = math.rsqrt %13 : vector<8x1xf32>
    %c0_5 = arith.constant 0 : index
    %c0_6 = arith.constant 0 : index
    %15 = vector.load %arg2[%c0_5, %c0_6] : memref<8x1xf32, #tpu.memory_space<vmem>>, vector<8x1xf32>
    %16 = arith.mulf %14, %15 : vector<8x1xf32>
    %17 = vector.broadcast %16 : vector<8x1xf32> to vector<8x256xf32>
    %18 = arith.mulf %6, %17 : vector<8x256xf32>
    %c0_7 = arith.constant 0 : index
    %c0_8 = arith.constant 0 : index
    %19 = vector.load %arg3[%c0_7, %c0_8] : memref<8x1xf32, #tpu.memory_space<vmem>>, vector<8x1xf32>
    %20 = vector.broadcast %19 : vector<8x1xf32> to vector<8x256xf32>
    %21 = arith.addf %18, %20 : vector<8x256xf32>
    %c0_9 = arith.constant 0 : index
    %c0_10 = arith.constant 0 : index
    %22 = vector.load %arg4[%c0_9, %c0_10] : memref<8x256xf32, #tpu.memory_space<vmem>>, vector<8x256xf32>
    tpu.vector_store %arg4[%c0_9, %c0_10], %21 {strides = array<i32>} : memref<8x256xf32, #tpu.memory_space<vmem>>, vector<8x256xf32>,
    %c0_11 = arith.constant 0 : index
    %c0_12 = arith.constant 0 : index
    %23 = vector.load %arg5[%c0_11, %c0_12] : memref<8x1xf32, #tpu.memory_space<vmem>>, vector<8x1xf32>
    tpu.vector_store %arg5[%c0_11, %c0_12], %4 {strides = array<i32>} : memref<8x1xf32, #tpu.memory_space<vmem>>, vector<8x1xf32>,
    return
  }
  func.func @transform_0(%arg0: i32) -> (i32, i32) {
    %c0_i32 = arith.constant 0 : i32
    %c0_i32_0 = arith.constant 0 : i32
    return %arg0, %c0_i32 : i32, i32
  }
  func.func @transform_1(%arg0: i32) -> (i32, i32) {
    %c0_i32 = arith.constant 0 : i32
    %c0_i32_0 = arith.constant 0 : i32
    return %arg0, %c0_i32 : i32, i32
  }
  func.func @transform_2(%arg0: i32) -> (i32, i32) {
    %c0_i32 = arith.constant 0 : i32
    %c0_i32_0 = arith.constant 0 : i32
    return %arg0, %c0_i32 : i32, i32
  }
  func.func @transform_3(%arg0: i32) -> (i32, i32) {
    %c0_i32 = arith.constant 0 : i32
    %c0_i32_0 = arith.constant 0 : i32
    return %arg0, %c0_i32 : i32, i32
  }
  func.func @transform_4(%arg0: i32) -> (i32, i32) {
    %c0_i32 = arith.constant 0 : i32
    %c0_i32_0 = arith.constant 0 : i32
    return %arg0, %c0_i32 : i32, i32
  }
}

</mosaic_0001>

<bundles_post_ra>
// kernel: tpu_custom_call.1
= control target key start
LH: loop header
LB: loop body
LE: loop exit
PB: predicated region body
PF: predicated region fallthrough
CT: control target
= control target key end

     0   :  { %s156_s0 = inlined_call_operand.vmem [shape: f32[8,256], index: 0, kind: input, shape index: {}]   ;;  %s157_s1 = inlined_call_operand.vmem [shape: f32[8,1], index: 1, kind: input, shape index: {}]   ;;  %s158_s2 = inlined_call_operand.vmem [shape: f32[8,1], index: 2, kind: input, shape index: {}]   ;;  %s159_s3 = inlined_call_operand.hbm [shape: f32[8,256], index: 3, kind: output, shape index: {0}]   ;;  %s160_s4 = inlined_call_operand.vmem [shape: f32[8,1], index: 4, kind: output, shape index: {1}]  }
   0x1   :  { %v17_v0 = vld [vmem:[%s156_s0] sm:$0xff]  ;;  %v18_v1 = vld [vmem:[%s156_s0 + $0x8] sm:$0xff] }
   0x2   :  { %10 = vsyncpa [#allocation3], 0  ;;  %v19_v2 = vadd.f32 %v18_v1, %v17_v0  ;;  %vm52_vm0 = vcmask 7168   ;;  %v102_v10 = vmov 0   ;;  %v33_v14 = vld [vmem:[%s157_s1] sm:$0xff]  ;;  %s103_s23 = smov [#allocation2]  }
   0x3   :  { %74 = vset.pattern.permute.xlu1 %v102_v10  ;;  %75 = vset.pattern.permute.xlu0 %v102_v10  ;;  %v42_v17 = vld [vmem:[%s158_s2] sm:$0xff]  ;;  %s60_s24 = sshll.u32 %s103_s23, 4  ;;  %s61_s24 = int_to_ptr.vmem [resolvable:$true] %s60_s24 }
   0x4   :  { %20 = vadd.xlane.f32.xlu0 %v19_v2  ;;  %s78_s1 = scalar_lea.vmem %s61_s24, 256  ;;  %p83_p1 = scmp.lt.s32.totalorder %s61_s24, %s61_s24 }
   0x5   :  { %p79_p0 = scmp.ne.s32.totalorder %s61_s24, %s78_s1  ;;  %p84_p2 = scmp.lt.s32.totalorder %s78_s1, %s78_s1 }
   0x7   :  { %p85_p3 = por %p84_p2, %p83_p1 }
   0x9   :  { %p86_p4 = pnand %p85_p3, %p79_p0 }
  0x91   :  { %v21_v3 = vpop.xlane.xlu0 %20 }
  0x92   :  { %v22_v4 = vmul.f32 0.00390625, %v21_v3 }
  0x94   :  { %v23_v5 = vsub.f32 %v17_v0, %v22_v4  ;;  %v24_v6 = vsub.f32 %v18_v1, %v22_v4  ;;  %53 = vst.msk [vmem:[%s160_s4] sm:$0xff] %vm52_vm0, %v22_v4 }
  0x96   :  { %v25_v7 = vmul.f32 %v23_v5, %v23_v5  ;;  %v26_v8 = vmul.f32 %v24_v6, %v24_v6 }
  0x98   :  { %v27_v9 = vadd.f32 %v26_v8, %v25_v7 }
  0x9a   :  { %28 = vadd.xlane.f32.xlu0 %v27_v9 }
 0x127   :  { %v29_v11 = vpop.xlane.xlu0 %28 }
 0x128   :  { %v30_v12 = vmul.f32 0.00390625, %v29_v11 }
 0x12a   :  { %v31_v13 = vadd.f32 1e-05, %v30_v12 }
 0x12c   :  { %76 = vrsqrt.f32 %v31_v13 }
 0x136   :  { %v77_v15 = vpop.eup %76 }
 0x137   :  { %v34_v16 = vmul.f32 %v77_v15, %v33_v14 }
 0x139   :  { %37 = vperm.xlu1 %74, %v34_v16  }
 0x13d   :  { %45 = vperm.xlu1 %74, %v42_v17  }
 0x1b8   :  { %v38_v18 = vpop.permute.xlu1 %37 }
 0x1b9   :  { %v40_v19 = vmul.f32 %v38_v18, %v23_v5  ;;  %v41_v20 = vmul.f32 %v38_v18, %v24_v6 }
 0x1bc   :  { %v46_v21 = vpop.permute.xlu1 %45 }
 0x1bd   :  { %v48_v22 = vadd.f32 %v46_v21, %v40_v19  ;;  %v49_v23 = vadd.f32 %v46_v21, %v41_v20 }
 0x1bf   :  { %50 = vst [vmem:[#allocation2] sm:$0xff] %v48_v22  ;;  %51 = vst [vmem:[#allocation2 + $0x8] sm:$0xff] %v49_v23 }
 0x1c0   :  { %89 = shalt.err (!%p86_p4)
}
 0x1c1   :  { %s90_s26 = scalar_lea.hbm %s159_s3, 256 }
 0x1c2   :  { %p91_p5 = scmp.ne.s32.totalorder %s159_s3, %s90_s26  ;;  %p94_p6 = scmp.lt.u32.totalorder %s90_s26, %s159_s3 }
 0x1c4   :  { %p96_p7 = pnand %p94_p6, %p91_p5 }
 0x1c6   :  { %99 = shalt.err (!%p96_p7)
}
 0x1c7   :  { %63 = dma.vmem_to_hbm [thread:$0]  %s61_s24, 256, %s159_s3, [#allocation3]  }
 0x1c8   :  { %100 = dma.done.wait [#allocation3], 256  }
 0x1c9   :  { %101 = vsyncadd [#allocation3], 4294967040 }
 0x1ca   :  { %71 = vsyncpa [#allocation3], 1 }

</bundles_post_ra>
